<compile_context>
chip_gen: v6e
topology: v6e:2x2x1
jax: 0.10.0
libtpu: 0.0.40
codegen_flags: <defaults>
</compile_context>

<pallas_src>
import jax
import jax.numpy as jnp
from jax.experimental import pallas as pl
from jax.experimental.pallas import tpu as pltpu


# ---------------------------------------------------------------------------
# Fused kernel: one batch sample per grid step.
# Activations are 2-D (L, C) f32 values, resident in VMEM / vregs.
# ---------------------------------------------------------------------------
def _resnet1d_fused_kernel(x_ref,
                           w_stem, b_stem,
                           w_b0c1, b_b0c1, w_b0c2, b_b0c2,
                           w_b1d, b_b1d, w_b1c1, b_b1c1, w_b1c2, b_b1c2,
                           o_ref, s1_ref, s2_ref):
    l1 = s1_ref.shape[0] - 2          # stem conv output length
    l2 = s2_ref.shape[0] - 2          # maxpool / block0 output length
    l3 = o_ref.shape[0]               # block1 output length

    def conv(taps, w_ref, b_ref):
        """Conv1d(bias=False) + BN(inference), as ONE merged MXU contraction.

        taps : list of K (Lout, Cin) f32 tap views (stride/padding already resolved)
        w_ref: (K*Cin, Cout) bf16 BN-folded weights, row index = k*Cin + ci
        b_ref: (1, Cout) f32 BN bias
        bf16 operands, f32 accumulation; epilogue stays f32.
        """
        lhs = taps[0] if len(taps) == 1 else jnp.concatenate(taps, axis=-1)
        out = jnp.dot(lhs.astype(jnp.bfloat16), w_ref[...],
                      preferred_element_type=jnp.float32)
        return out + b_ref[...]

    def pad1(h):
        """Zero-pad one row at each end of the L (sublane) axis."""
        z = jnp.zeros((1, h.shape[1]), jnp.float32)
        return jnp.concatenate([z, h, z], axis=0)

    relu = lambda v: jnp.maximum(v, 0.0)

    # --- stem: Conv1d(k3, s2, p1) + BN + ReLU.
    #     Input arrives already zero-padded along L; taps = strided reads of the input ref. ---
    h = relu(conv([x_ref[pl.ds(t, l1, stride=2), :] for t in range(3)], w_stem, b_stem))

    # --- MaxPool1d(3, 2, 1): pure VPU max over 3 strided views of the padded stem output.
    #     Zero padding == -inf padding because h is post-ReLU (>= 0). ---
    s1_ref[...] = pad1(h)                                   # one full-width store
    h = jnp.maximum(
        jnp.maximum(s1_ref[pl.ds(0, l2, stride=2), :],
                    s1_ref[pl.ds(1, l2, stride=2), :]),
        s1_ref[pl.ds(2, l2, stride=2), :])

    # --- BasicBlock1d #0 (stride 1, identity residual): taps = shifted slices of values ---
    res = h
    hp = pad1(h)
    h1 = relu(conv([hp[t:t + l2, :] for t in range(3)], w_b0c1, b_b0c1))
    hp1 = pad1(h1)
    h = relu(conv([hp1[t:t + l2, :] for t in range(3)], w_b0c2, b_b0c2) + res)

    # --- BasicBlock1d #1 (stride 2, 1x1/s2 downsample residual) ---
    s2_ref[...] = pad1(h)                                   # one full-width store
    res = conv([s2_ref[pl.ds(1, l3, stride=2), :]], w_b1d, b_b1d)            # no ReLU
    h1 = relu(conv([s2_ref[pl.ds(t, l3, stride=2), :] for t in range(3)], w_b1c1, b_b1c1))
    hp1 = pad1(h1)
    h = relu(conv([hp1[t:t + l3, :] for t in range(3)], w_b1c2, b_b1c2) + res)

    o_ref[...] = h.astype(o_ref.dtype)


# ---------------------------------------------------------------------------
# Wrapper helpers (parameter folding, run once, layout plumbing only)
# ---------------------------------------------------------------------------
def _fold_bn(w, scale, bias):
    """(Cout, Cin, K) conv weight + BN scale/bias -> (K*Cin, Cout) bf16 weight, (1, Cout) f32 bias."""
    cout, cin, k = w.shape
    wf = w.astype(jnp.float32) * scale[:, None, None]
    w2 = jnp.transpose(wf, (2, 1, 0)).reshape(k * cin, cout)   # row index = k*Cin + ci
    return w2.astype(jnp.bfloat16), bias.reshape(1, cout).astype(jnp.float32)


# ---------------------------------------------------------------------------
# Forward pass (single fused pallas_call)
# ---------------------------------------------------------------------------
def resnet1d_forward(x, p):
    n, cin, l = x.shape
    inplanes = p["stem_w"].shape[0]
    l1 = (l + 2 - 3) // 2 + 1          # stem conv  (k3, s2, p1)
    l2 = (l1 + 2 - 3) // 2 + 1         # maxpool    (k3, s2, p1)
    l3 = (l2 + 2 - 3) // 2 + 1         # block1     (k3, s2, p1)

    b0, b1 = p["block0"], p["block1"]
    w_stem, b_stem = _fold_bn(p["stem_w"], p["stem_scale"], p["stem_bias"])
    w_b0c1, b_b0c1 = _fold_bn(b0["w1"], b0["s1"], b0["b1"])
    w_b0c2, b_b0c2 = _fold_bn(b0["w2"], b0["s2"], b0["b2"])
    w_b1d, b_b1d = _fold_bn(b1["wd"], b1["sd"], b1["bd"])
    w_b1c1, b_b1c1 = _fold_bn(b1["w1"], b1["s1"], b1["b1"])
    w_b1c2, b_b1c2 = _fold_bn(b1["w2"], b1["s2"], b1["b2"])

    # Layout plumbing only: (N, Cin, L) -> channels-last (N, L, Cin), zero-padded along L.
    x_pad = jnp.pad(jnp.transpose(x, (0, 2, 1)).astype(jnp.float32),
                    ((0, 0), (1, 1), (0, 0)))

    consts = [w_stem, b_stem, w_b0c1, b_b0c1, w_b0c2, b_b0c2,
              w_b1d, b_b1d, w_b1c1, b_b1c1, w_b1c2, b_b1c2]

    flops = 2 * n * (l1 * 3 * cin * inplanes
                     + 2 * l2 * 3 * inplanes * inplanes
                     + l3 * inplanes * inplanes
                     + 2 * l3 * 3 * inplanes * inplanes)
    bytes_accessed = (x_pad.size * 4
                      + sum(int(c.size) * c.dtype.itemsize for c in consts)
                      + n * l3 * inplanes * 4)

    out = pl.pallas_call(
        _resnet1d_fused_kernel,
        out_shape=jax.ShapeDtypeStruct((n, l3, inplanes), jnp.float32),
        grid=(n,),                                       # batch axis; parallel across TCs on v7x
        in_specs=[pl.BlockSpec((None, l + 2, cin), lambda i: (i, 0, 0))]
                 + [pl.BlockSpec(c.shape, lambda i: (0, 0)) for c in consts],
        out_specs=pl.BlockSpec((None, l3, inplanes), lambda i: (i, 0, 0)),
        scratch_shapes=[pltpu.VMEM((l1 + 2, inplanes), jnp.float32),   # padded stem output
                        pltpu.VMEM((l2 + 2, inplanes), jnp.float32)],  # padded block0 output
        compiler_params=pltpu.CompilerParams(dimension_semantics=("parallel",)),
        cost_estimate=pl.CostEstimate(flops=flops, transcendentals=0,
                                      bytes_accessed=bytes_accessed),
    )(x_pad, *consts)

    # Back to the PyTorch (N, C, L) convention.
    return jnp.transpose(out, (0, 2, 1)).astype(x.dtype)


# ---------------------------------------------------------------------------
# Deterministic parameter construction (matches the module's __init__ shapes)
# ---------------------------------------------------------------------------
def _conv_w(key, cout, cin, k):
    return 0.1 * jax.random.normal(key, (cout, cin, k), jnp.float32)


def _bn_params(key, c, eps=1e-5):
    k1, k2, k3, k4 = jax.random.split(key, 4)
    gamma = 1.0 + 0.1 * jax.random.normal(k1, (c,), jnp.float32)
    beta = 0.1 * jax.random.normal(k2, (c,), jnp.float32)
    mean = 0.05 * jax.random.normal(k3, (c,), jnp.float32)
    var = 1.0 + 0.1 * jnp.abs(jax.random.normal(k4, (c,), jnp.float32))
    scale = gamma / jnp.sqrt(var + eps)
    bias = beta - mean * scale
    return scale, bias


def init_params(key, input_channels=4, inplanes=16):
    keys = jax.random.split(key, 16)
    p = {}
    # stem: Conv1d(input_channels, inplanes, k=3, s=2, p=1, bias=False) + BN
    p["stem_w"] = _conv_w(keys[0], inplanes, input_channels, 3)
    p["stem_scale"], p["stem_bias"] = _bn_params(keys[1], inplanes)
    # layer0: BasicBlock1d(inplanes, inplanes, stride=1, kernel_size=[3,3]), no downsample
    b0 = {}
    b0["w1"] = _conv_w(keys[2], inplanes, inplanes, 3)
    b0["s1"], b0["b1"] = _bn_params(keys[3], inplanes)
    b0["w2"] = _conv_w(keys[4], inplanes, inplanes, 3)
    b0["s2"], b0["b2"] = _bn_params(keys[5], inplanes)
    p["block0"] = b0
    # layer1: BasicBlock1d(inplanes, inplanes, stride=2, kernel_size=[3,3]) + 1x1/s2 downsample
    b1 = {}
    b1["w1"] = _conv_w(keys[6], inplanes, inplanes, 3)
    b1["s1"], b1["b1"] = _bn_params(keys[7], inplanes)
    b1["w2"] = _conv_w(keys[8], inplanes, inplanes, 3)
    b1["s2"], b1["b2"] = _bn_params(keys[9], inplanes)
    b1["wd"] = _conv_w(keys[10], inplanes, inplanes, 1)
    b1["sd"], b1["bd"] = _bn_params(keys[11], inplanes)
    p["block1"] = b1
    return p


# ---------------------------------------------------------------------------
# Pure-JAX reference (for self-check)
# ---------------------------------------------------------------------------
def _conv_ref(x, w, stride, padding):
    return jax.lax.conv_general_dilated(
        x, w, (stride,), [(padding, padding)],
        dimension_numbers=("NCH", "OIH", "NCH"),
        precision=jax.lax.Precision.HIGHEST)


def _bn_ref(x, scale, bias):
    return x * scale[None, :, None] + bias[None, :, None]


def resnet1d_ref(x, p):
    h = jax.nn.relu(_bn_ref(_conv_ref(x, p["stem_w"], 2, 1), p["stem_scale"], p["stem_bias"]))
    h = jax.lax.reduce_window(h, -jnp.inf, jax.lax.max,
                              (1, 1, 3), (1, 1, 2), [(0, 0), (0, 0), (1, 1)])
    b = p["block0"]
    h1 = jax.nn.relu(_bn_ref(_conv_ref(h, b["w1"], 1, 1), b["s1"], b["b1"]))
    h2 = _bn_ref(_conv_ref(h1, b["w2"], 1, 1), b["s2"], b["b2"])
    h = jax.nn.relu(h2 + h)
    b = p["block1"]
    res = _bn_ref(_conv_ref(h, b["wd"], 2, 0), b["sd"], b["bd"])
    h1 = jax.nn.relu(_bn_ref(_conv_ref(h, b["w1"], 2, 1), b["s1"], b["b1"]))
    h2 = _bn_ref(_conv_ref(h1, b["w2"], 1, 1), b["s2"], b["b2"])
    return jax.nn.relu(h2 + res)


# ---------------------------------------------------------------------------
if __name__ == "__main__":
    key = jax.random.PRNGKey(0)
    kx, kp = jax.random.split(key)

    N, C_IN, L = 2, 4, 64
    x = jax.random.normal(kx, (N, C_IN, L), jnp.float32)
    params = init_params(kp, input_channels=C_IN, inplanes=16)

    out = jax.block_until_ready(resnet1d_forward(x, params))
    ref = jax.block_until_ready(resnet1d_ref(x, params))

    assert out.shape == (N, 16, 8), f"unexpected output shape {out.shape}"
    # bf16 MXU operands with f32 accumulation -> compare at bf16-appropriate tolerance.
    max_err = float(jnp.max(jnp.abs(out - ref)))
    assert jnp.allclose(out, ref, rtol=1e-2, atol=2e-2), (
        f"Pallas output != JAX reference (max |diff| = {max_err})")

    print("KERNEL_OK")
</pallas_src>

<mosaic_0001>
module attributes {stable_mosaic.version = 11 : i64} {
  func.func @_resnet1d_fused_kernel(%arg0: i32, %arg1: memref<1x66x4xf32, #tpu.memory_space<vmem>>, %arg2: memref<12x16xbf16, #tpu.memory_space<vmem>>, %arg3: memref<1x16xf32, #tpu.memory_space<vmem>>, %arg4: memref<48x16xbf16, #tpu.memory_space<vmem>>, %arg5: memref<1x16xf32, #tpu.memory_space<vmem>>, %arg6: memref<48x16xbf16, #tpu.memory_space<vmem>>, %arg7: memref<1x16xf32, #tpu.memory_space<vmem>>, %arg8: memref<16x16xbf16, #tpu.memory_space<vmem>>, %arg9: memref<1x16xf32, #tpu.memory_space<vmem>>, %arg10: memref<48x16xbf16, #tpu.memory_space<vmem>>, %arg11: memref<1x16xf32, #tpu.memory_space<vmem>>, %arg12: memref<48x16xbf16, #tpu.memory_space<vmem>>, %arg13: memref<1x16xf32, #tpu.memory_space<vmem>>, %arg14: memref<1x8x16xf32, #tpu.memory_space<vmem>>, %arg15: memref<34x16xf32, #tpu.memory_space<vmem>>, %arg16: memref<18x16xf32, #tpu.memory_space<vmem>>) attributes {dimension_semantics = [#tpu.dimension_semantics<parallel>], iteration_bounds = array<i64: 2>, scalar_prefetch = 0 : i64, scratch_operands = 2 : i64, tpu.core_type = #tpu.core_type<tc>, window_params = [{transform_indices = @transform_0, window_bounds = array<i64: 1, 66, 4>}, {pipeline_mode = #tpu.pipeline_mode<synchronous>, transform_indices = @transform_1, window_bounds = array<i64: 12, 16>}, {pipeline_mode = #tpu.pipeline_mode<synchronous>, transform_indices = @transform_2, window_bounds = array<i64: 1, 16>}, {pipeline_mode = #tpu.pipeline_mode<synchronous>, transform_indices = @transform_3, window_bounds = array<i64: 48, 16>}, {pipeline_mode = #tpu.pipeline_mode<synchronous>, transform_indices = @transform_4, window_bounds = array<i64: 1, 16>}, {pipeline_mode = #tpu.pipeline_mode<synchronous>, transform_indices = @transform_5, window_bounds = array<i64: 48, 16>}, {pipeline_mode = #tpu.pipeline_mode<synchronous>, transform_indices = @transform_6, window_bounds = array<i64: 1, 16>}, {pipeline_mode = #tpu.pipeline_mode<synchronous>, transform_indices = @transform_7, window_bounds = array<i64: 16, 16>}, {pipeline_mode = #tpu.pipeline_mode<synchronous>, transform_indices = @transform_8, window_bounds = array<i64: 1, 16>}, {pipeline_mode = #tpu.pipeline_mode<synchronous>, transform_indices = @transform_9, window_bounds = array<i64: 48, 16>}, {pipeline_mode = #tpu.pipeline_mode<synchronous>, transform_indices = @transform_10, window_bounds = array<i64: 1, 16>}, {pipeline_mode = #tpu.pipeline_mode<synchronous>, transform_indices = @transform_11, window_bounds = array<i64: 48, 16>}, {pipeline_mode = #tpu.pipeline_mode<synchronous>, transform_indices = @transform_12, window_bounds = array<i64: 1, 16>}, {transform_indices = @transform_13, window_bounds = array<i64: 1, 8, 16>}]} {
    %c0 = arith.constant 0 : index
    %c0_0 = arith.constant 0 : index
    %c0_1 = arith.constant 0 : index
    %0 = tpu.strided_load %arg1[%c0, %c0_0, %c0_1] {strides = array<i32: 1, 2, 1>} : memref<1x66x4xf32, #tpu.memory_space<vmem>>, vector<1x32x4xf32>
    %1 = vector.shape_cast %0 : vector<1x32x4xf32> to vector<32x4xf32>
    %c0_2 = arith.constant 0 : index
    %c1 = arith.constant 1 : index
    %c0_3 = arith.constant 0 : index
    %2 = tpu.strided_load %arg1[%c0_2, %c1, %c0_3] {strides = array<i32: 1, 2, 1>} : memref<1x66x4xf32, #tpu.memory_space<vmem>>, vector<1x32x4xf32>
    %3 = vector.shape_cast %2 : vector<1x32x4xf32> to vector<32x4xf32>
    %c0_4 = arith.constant 0 : index
    %c2 = arith.constant 2 : index
    %c0_5 = arith.constant 0 : index
    %4 = tpu.strided_load %arg1[%c0_4, %c2, %c0_5] {strides = array<i32: 1, 2, 1>} : memref<1x66x4xf32, #tpu.memory_space<vmem>>, vector<1x32x4xf32>
    %5 = vector.shape_cast %4 : vector<1x32x4xf32> to vector<32x4xf32>
    %6 = tpu.concatenate %1, %3, %5 in 1 : vector<32x4xf32>, vector<32x4xf32>, vector<32x4xf32> -> vector<32x12xf32>
    %7 = arith.truncf %6 : vector<32x12xf32> to vector<32x12xbf16>
    %c0_6 = arith.constant 0 : index
    %c0_7 = arith.constant 0 : index
    %8 = vector.load %arg2[%c0_6, %c0_7] : memref<12x16xbf16, #tpu.memory_space<vmem>>, vector<12x16xbf16>
    %cst = arith.constant dense<0.000000e+00> : vector<32x16xf32>
    %9 = tpu.matmul %7, %8, %cst {dimension_numbers = #tpu.dot_dimension_numbers<[1], [0], [0], [1], [0, 0, 1, 1], [], []>} : vector<32x12xbf16>, vector<12x16xbf16>, vector<32x16xf32> -> vector<32x16xf32>
    %c0_8 = arith.constant 0 : index
    %c0_9 = arith.constant 0 : index
    %10 = vector.load %arg3[%c0_8, %c0_9] : memref<1x16xf32, #tpu.memory_space<vmem>>, vector<1x16xf32>
    %11 = vector.broadcast %10 : vector<1x16xf32> to vector<32x16xf32>
    %12 = arith.addf %9, %11 : vector<32x16xf32>
    %cst_10 = arith.constant 0.000000e+00 : f32
    %13 = vector.broadcast %cst_10 : f32 to vector<32x16xf32>
    %14 = arith.maximumf %12, %13 : vector<32x16xf32>
    %cst_11 = arith.constant 0.000000e+00 : f32
    %15 = vector.broadcast %cst_11 : f32 to vector<1x16xf32>
    %16 = tpu.concatenate %15, %14, %15 in 0 : vector<1x16xf32>, vector<32x16xf32>, vector<1x16xf32> -> vector<34x16xf32>
    %c0_12 = arith.constant 0 : index
    %c0_13 = arith.constant 0 : index
    %17 = vector.load %arg15[%c0_12, %c0_13] : memref<34x16xf32, #tpu.memory_space<vmem>>, vector<34x16xf32>
    tpu.vector_store %arg15[%c0_12, %c0_13], %16 {strides = array<i32>} : memref<34x16xf32, #tpu.memory_space<vmem>>, vector<34x16xf32>,
    %c0_14 = arith.constant 0 : index
    %c0_15 = arith.constant 0 : index
    %18 = tpu.strided_load %arg15[%c0_14, %c0_15] {strides = array<i32: 2, 1>} : memref<34x16xf32, #tpu.memory_space<vmem>>, vector<16x16xf32>
    %c1_16 = arith.constant 1 : index
    %c0_17 = arith.constant 0 : index
    %19 = tpu.strided_load %arg15[%c1_16, %c0_17] {strides = array<i32: 2, 1>} : memref<34x16xf32, #tpu.memory_space<vmem>>, vector<16x16xf32>
    %20 = arith.maximumf %18, %19 : vector<16x16xf32>
    %c2_18 = arith.constant 2 : index
    %c0_19 = arith.constant 0 : index
    %21 = tpu.strided_load %arg15[%c2_18, %c0_19] {strides = array<i32: 2, 1>} : memref<34x16xf32, #tpu.memory_space<vmem>>, vector<16x16xf32>
    %22 = arith.maximumf %20, %21 : vector<16x16xf32>
    %cst_20 = arith.constant 0.000000e+00 : f32
    %23 = vector.broadcast %cst_20 : f32 to vector<1x16xf32>
    %24 = tpu.concatenate %23, %22, %23 in 0 : vector<1x16xf32>, vector<16x16xf32>, vector<1x16xf32> -> vector<18x16xf32>
    %25 = vector.extract_strided_slice %24 {offsets = [0, 0], sizes = [16, 16], strides = [1, 1]} : vector<18x16xf32> to vector<16x16xf32>
    %26 = vector.extract_strided_slice %24 {offsets = [1, 0], sizes = [16, 16], strides = [1, 1]} : vector<18x16xf32> to vector<16x16xf32>
    %27 = vector.extract_strided_slice %24 {offsets = [2, 0], sizes = [16, 16], strides = [1, 1]} : vector<18x16xf32> to vector<16x16xf32>
    %28 = tpu.concatenate %25, %26, %27 in 1 : vector<16x16xf32>, vector<16x16xf32>, vector<16x16xf32> -> vector<16x48xf32>
    %29 = arith.truncf %28 : vector<16x48xf32> to vector<16x48xbf16>
    %c0_21 = arith.constant 0 : index
    %c0_22 = arith.constant 0 : index
    %30 = vector.load %arg4[%c0_21, %c0_22] : memref<48x16xbf16, #tpu.memory_space<vmem>>, vector<48x16xbf16>
    %cst_23 = arith.constant dense<0.000000e+00> : vector<16x16xf32>
    %31 = tpu.matmul %29, %30, %cst_23 {dimension_numbers = #tpu.dot_dimension_numbers<[1], [0], [0], [1], [0, 0, 1, 1], [], []>} : vector<16x48xbf16>, vector<48x16xbf16>, vector<16x16xf32> -> vector<16x16xf32>
    %c0_24 = arith.constant 0 : index
    %c0_25 = arith.constant 0 : index
    %32 = vector.load %arg5[%c0_24, %c0_25] : memref<1x16xf32, #tpu.memory_space<vmem>>, vector<1x16xf32>
    %33 = vector.broadcast %32 : vector<1x16xf32> to vector<16x16xf32>
    %34 = arith.addf %31, %33 : vector<16x16xf32>
    %cst_26 = arith.constant 0.000000e+00 : f32
    %35 = vector.broadcast %cst_26 : f32 to vector<16x16xf32>
    %36 = arith.maximumf %34, %35 : vector<16x16xf32>
    %cst_27 = arith.constant 0.000000e+00 : f32
    %37 = vector.broadcast %cst_27 : f32 to vector<1x16xf32>
    %38 = tpu.concatenate %37, %36, %37 in 0 : vector<1x16xf32>, vector<16x16xf32>, vector<1x16xf32> -> vector<18x16xf32>
    %39 = vector.extract_strided_slice %38 {offsets = [0, 0], sizes = [16, 16], strides = [1, 1]} : vector<18x16xf32> to vector<16x16xf32>
    %40 = vector.extract_strided_slice %38 {offsets = [1, 0], sizes = [16, 16], strides = [1, 1]} : vector<18x16xf32> to vector<16x16xf32>
    %41 = vector.extract_strided_slice %38 {offsets = [2, 0], sizes = [16, 16], strides = [1, 1]} : vector<18x16xf32> to vector<16x16xf32>
    %42 = tpu.concatenate %39, %40, %41 in 1 : vector<16x16xf32>, vector<16x16xf32>, vector<16x16xf32> -> vector<16x48xf32>
    %43 = arith.truncf %42 : vector<16x48xf32> to vector<16x48xbf16>
    %c0_28 = arith.constant 0 : index
    %c0_29 = arith.constant 0 : index
    %44 = vector.load %arg6[%c0_28, %c0_29] : memref<48x16xbf16, #tpu.memory_space<vmem>>, vector<48x16xbf16>
    %cst_30 = arith.constant dense<0.000000e+00> : vector<16x16xf32>
    %45 = tpu.matmul %43, %44, %cst_30 {dimension_numbers = #tpu.dot_dimension_numbers<[1], [0], [0], [1], [0, 0, 1, 1], [], []>} : vector<16x48xbf16>, vector<48x16xbf16>, vector<16x16xf32> -> vector<16x16xf32>
    %c0_31 = arith.constant 0 : index
    %c0_32 = arith.constant 0 : index
    %46 = vector.load %arg7[%c0_31, %c0_32] : memref<1x16xf32, #tpu.memory_space<vmem>>, vector<1x16xf32>
    %47 = vector.broadcast %46 : vector<1x16xf32> to vector<16x16xf32>
    %48 = arith.addf %45, %47 : vector<16x16xf32>
    %49 = arith.addf %48, %22 : vector<16x16xf32>
    %cst_33 = arith.constant 0.000000e+00 : f32
    %50 = vector.broadcast %cst_33 : f32 to vector<16x16xf32>
    %51 = arith.maximumf %49, %50 : vector<16x16xf32>
    %cst_34 = arith.constant 0.000000e+00 : f32
    %52 = vector.broadcast %cst_34 : f32 to vector<1x16xf32>
    %53 = tpu.concatenate %52, %51, %52 in 0 : vector<1x16xf32>, vector<16x16xf32>, vector<1x16xf32> -> vector<18x16xf32>
    %c0_35 = arith.constant 0 : index
    %c0_36 = arith.constant 0 : index
    %54 = vector.load %arg16[%c0_35, %c0_36] : memref<18x16xf32, #tpu.memory_space<vmem>>, vector<18x16xf32>
    tpu.vector_store %arg16[%c0_35, %c0_36], %53 {strides = array<i32>} : memref<18x16xf32, #tpu.memory_space<vmem>>, vector<18x16xf32>,
    %c1_37 = arith.constant 1 : index
    %c0_38 = arith.constant 0 : index
    %55 = tpu.strided_load %arg16[%c1_37, %c0_38] {strides = array<i32: 2, 1>} : memref<18x16xf32, #tpu.memory_space<vmem>>, vector<8x16xf32>
    %56 = arith.truncf %55 : vector<8x16xf32> to vector<8x16xbf16>
    %c0_39 = arith.constant 0 : index
    %c0_40 = arith.constant 0 : index
    %57 = vector.load %arg8[%c0_39, %c0_40] : memref<16x16xbf16, #tpu.memory_space<vmem>>, vector<16x16xbf16>
    %cst_41 = arith.constant dense<0.000000e+00> : vector<8x16xf32>
    %58 = tpu.matmul %56, %57, %cst_41 {dimension_numbers = #tpu.dot_dimension_numbers<[1], [0], [0], [1], [0, 0, 1, 1], [], []>} : vector<8x16xbf16>, vector<16x16xbf16>, vector<8x16xf32> -> vector<8x16xf32>
    %c0_42 = arith.constant 0 : index
    %c0_43 = arith.constant 0 : index
    %59 = vector.load %arg9[%c0_42, %c0_43] : memref<1x16xf32, #tpu.memory_space<vmem>>, vector<1x16xf32>
    %60 = vector.broadcast %59 : vector<1x16xf32> to vector<8x16xf32>
    %61 = arith.addf %58, %60 : vector<8x16xf32>
    %c0_44 = arith.constant 0 : index
    %c0_45 = arith.constant 0 : index
    %62 = tpu.strided_load %arg16[%c0_44, %c0_45] {strides = array<i32: 2, 1>} : memref<18x16xf32, #tpu.memory_space<vmem>>, vector<8x16xf32>
    %c1_46 = arith.constant 1 : index
    %c0_47 = arith.constant 0 : index
    %63 = tpu.strided_load %arg16[%c1_46, %c0_47] {strides = array<i32: 2, 1>} : memref<18x16xf32, #tpu.memory_space<vmem>>, vector<8x16xf32>
    %c2_48 = arith.constant 2 : index
    %c0_49 = arith.constant 0 : index
    %64 = tpu.strided_load %arg16[%c2_48, %c0_49] {strides = array<i32: 2, 1>} : memref<18x16xf32, #tpu.memory_space<vmem>>, vector<8x16xf32>
    %65 = tpu.concatenate %62, %63, %64 in 1 : vector<8x16xf32>, vector<8x16xf32>, vector<8x16xf32> -> vector<8x48xf32>
    %66 = arith.truncf %65 : vector<8x48xf32> to vector<8x48xbf16>
    %c0_50 = arith.constant 0 : index
    %c0_51 = arith.constant 0 : index
    %67 = vector.load %arg10[%c0_50, %c0_51] : memref<48x16xbf16, #tpu.memory_space<vmem>>, vector<48x16xbf16>
    %cst_52 = arith.constant dense<0.000000e+00> : vector<8x16xf32>
    %68 = tpu.matmul %66, %67, %cst_52 {dimension_numbers = #tpu.dot_dimension_numbers<[1], [0], [0], [1], [0, 0, 1, 1], [], []>} : vector<8x48xbf16>, vector<48x16xbf16>, vector<8x16xf32> -> vector<8x16xf32>
    %c0_53 = arith.constant 0 : index
    %c0_54 = arith.constant 0 : index
    %69 = vector.load %arg11[%c0_53, %c0_54] : memref<1x16xf32, #tpu.memory_space<vmem>>, vector<1x16xf32>
    %70 = vector.broadcast %69 : vector<1x16xf32> to vector<8x16xf32>
    %71 = arith.addf %68, %70 : vector<8x16xf32>
    %cst_55 = arith.constant 0.000000e+00 : f32
    %72 = vector.broadcast %cst_55 : f32 to vector<8x16xf32>
    %73 = arith.maximumf %71, %72 : vector<8x16xf32>
    %cst_56 = arith.constant 0.000000e+00 : f32
    %74 = vector.broadcast %cst_56 : f32 to vector<1x16xf32>
    %75 = tpu.concatenate %74, %73, %74 in 0 : vector<1x16xf32>, vector<8x16xf32>, vector<1x16xf32> -> vector<10x16xf32>
    %76 = vector.extract_strided_slice %75 {offsets = [0, 0], sizes = [8, 16], strides = [1, 1]} : vector<10x16xf32> to vector<8x16xf32>
    %77 = vector.extract_strided_slice %75 {offsets = [1, 0], sizes = [8, 16], strides = [1, 1]} : vector<10x16xf32> to vector<8x16xf32>
    %78 = vector.extract_strided_slice %75 {offsets = [2, 0], sizes = [8, 16], strides = [1, 1]} : vector<10x16xf32> to vector<8x16xf32>
    %79 = tpu.concatenate %76, %77, %78 in 1 : vector<8x16xf32>, vector<8x16xf32>, vector<8x16xf32> -> vector<8x48xf32>
    %80 = arith.truncf %79 : vector<8x48xf32> to vector<8x48xbf16>
    %c0_57 = arith.constant 0 : index
    %c0_58 = arith.constant 0 : index
    %81 = vector.load %arg12[%c0_57, %c0_58] : memref<48x16xbf16, #tpu.memory_space<vmem>>, vector<48x16xbf16>
    %cst_59 = arith.constant dense<0.000000e+00> : vector<8x16xf32>
    %82 = tpu.matmul %80, %81, %cst_59 {dimension_numbers = #tpu.dot_dimension_numbers<[1], [0], [0], [1], [0, 0, 1, 1], [], []>} : vector<8x48xbf16>, vector<48x16xbf16>, vector<8x16xf32> -> vector<8x16xf32>
    %c0_60 = arith.constant 0 : index
    %c0_61 = arith.constant 0 : index
    %83 = vector.load %arg13[%c0_60, %c0_61] : memref<1x16xf32, #tpu.memory_space<vmem>>, vector<1x16xf32>
    %84 = vector.broadcast %83 : vector<1x16xf32> to vector<8x16xf32>
    %85 = arith.addf %82, %84 : vector<8x16xf32>
    %86 = arith.addf %85, %61 : vector<8x16xf32>
    %cst_62 = arith.constant 0.000000e+00 : f32
    %87 = vector.broadcast %cst_62 : f32 to vector<8x16xf32>
    %88 = arith.maximumf %86, %87 : vector<8x16xf32>
    %c0_63 = arith.constant 0 : index
    %c0_64 = arith.constant 0 : index
    %c0_65 = arith.constant 0 : index
    %89 = vector.load %arg14[%c0_63, %c0_64, %c0_65] : memref<1x8x16xf32, #tpu.memory_space<vmem>>, vector<1x8x16xf32>
    %90 = vector.shape_cast %89 : vector<1x8x16xf32> to vector<8x16xf32>
    %91 = vector.shape_cast %88 : vector<8x16xf32> to vector<1x8x16xf32>
    tpu.vector_store %arg14[%c0_63, %c0_64, %c0_65], %91 {strides = array<i32>} : memref<1x8x16xf32, #tpu.memory_space<vmem>>, vector<1x8x16xf32>,
    return
  }
  func.func @transform_0(%arg0: i32) -> (i32, i32, i32) {
    %c0_i32 = arith.constant 0 : i32
    %c0_i32_0 = arith.constant 0 : i32
    %c0_i32_1 = arith.constant 0 : i32
    return %arg0, %c0_i32, %c0_i32_0 : i32, i32, i32
  }
  func.func @transform_1(%arg0: i32) -> (i32, i32) {
    %c0_i32 = arith.constant 0 : i32
    %c0_i32_0 = arith.constant 0 : i32
    %c0_i32_1 = arith.constant 0 : i32
    return %c0_i32, %c0_i32_0 : i32, i32
  }
  func.func @transform_2(%arg0: i32) -> (i32, i32) {
    %c0_i32 = arith.constant 0 : i32
    %c0_i32_0 = arith.constant 0 : i32
    %c0_i32_1 = arith.constant 0 : i32
    return %c0_i32, %c0_i32_0 : i32, i32
  }
  func.func @transform_3(%arg0: i32) -> (i32, i32) {
    %c0_i32 = arith.constant 0 : i32
    %c0_i32_0 = arith.constant 0 : i32
    %c0_i32_1 = arith.constant 0 : i32
    return %c0_i32, %c0_i32_0 : i32, i32
  }
  func.func @transform_4(%arg0: i32) -> (i32, i32) {
    %c0_i32 = arith.constant 0 : i32
    %c0_i32_0 = arith.constant 0 : i32
    %c0_i32_1 = arith.constant 0 : i32
    return %c0_i32, %c0_i32_0 : i32, i32
  }
  func.func @transform_5(%arg0: i32) -> (i32, i32) {
    %c0_i32 = arith.constant 0 : i32
    %c0_i32_0 = arith.constant 0 : i32
    %c0_i32_1 = arith.constant 0 : i32
    return %c0_i32, %c0_i32_0 : i32, i32
  }
  func.func @transform_6(%arg0: i32) -> (i32, i32) {
    %c0_i32 = arith.constant 0 : i32
    %c0_i32_0 = arith.constant 0 : i32
    %c0_i32_1 = arith.constant 0 : i32
    return %c0_i32, %c0_i32_0 : i32, i32
  }
  func.func @transform_7(%arg0: i32) -> (i32, i32) {
    %c0_i32 = arith.constant 0 : i32
    %c0_i32_0 = arith.constant 0 : i32
    %c0_i32_1 = arith.constant 0 : i32
    return %c0_i32, %c0_i32_0 : i32, i32
  }
  func.func @transform_8(%arg0: i32) -> (i32, i32) {
    %c0_i32 = arith.constant 0 : i32
    %c0_i32_0 = arith.constant 0 : i32
    %c0_i32_1 = arith.constant 0 : i32
    return %c0_i32, %c0_i32_0 : i32, i32
  }
  func.func @transform_9(%arg0: i32) -> (i32, i32) {
    %c0_i32 = arith.constant 0 : i32
    %c0_i32_0 = arith.constant 0 : i32
    %c0_i32_1 = arith.constant 0 : i32
    return %c0_i32, %c0_i32_0 : i32, i32
  }
  func.func @transform_10(%arg0: i32) -> (i32, i32) {
    %c0_i32 = arith.constant 0 : i32
    %c0_i32_0 = arith.constant 0 : i32
    %c0_i32_1 = arith.constant 0 : i32
    return %c0_i32, %c0_i32_0 : i32, i32
  }
  func.func @transform_11(%arg0: i32) -> (i32, i32) {
    %c0_i32 = arith.constant 0 : i32
    %c0_i32_0 = arith.constant 0 : i32
    %c0_i32_1 = arith.constant 0 : i32
    return %c0_i32, %c0_i32_0 : i32, i32
  }
  func.func @transform_12(%arg0: i32) -> (i32, i32) {
    %c0_i32 = arith.constant 0 : i32
    %c0_i32_0 = arith.constant 0 : i32
    %c0_i32_1 = arith.constant 0 : i32
    return %c0_i32, %c0_i32_0 : i32, i32
  }
  func.func @transform_13(%arg0: i32) -> (i32, i32, i32) {
    %c0_i32 = arith.constant 0 : i32
    %c0_i32_0 = arith.constant 0 : i32
    %c0_i32_1 = arith.constant 0 : i32
    return %arg0, %c0_i32, %c0_i32_0 : i32, i32, i32
  }
}

</mosaic_0001>

<bundles_post_ra>
// kernel: tpu_custom_call.1
= control target key start
LH: loop header
LB: loop body
LE: loop exit
PB: predicated region body
PF: predicated region fallthrough
CT: control target
= control target key end

     0   :  { %s1827_s0 = inlined_call_operand.vmem [shape: f32[2,66,4], index: 0, kind: input, shape index: {}]   ;;  %s1828_s1 = inlined_call_operand.vmem [shape: bf16[12,16], index: 1, kind: input, shape index: {}]   ;;  %s1829_s2 = inlined_call_operand.vmem [shape: f32[1,16], index: 2, kind: input, shape index: {}]   ;;  %s1830_s3 = inlined_call_operand.vmem [shape: bf16[48,16], index: 3, kind: input, shape index: {}]   ;;  %s1831_s4 = inlined_call_operand.vmem [shape: f32[1,16], index: 4, kind: input, shape index: {}]   ;;  %s1832_s5 = inlined_call_operand.vmem [shape: bf16[48,16], index: 5, kind: input, shape index: {}]   ;;  %s1833_s6 = inlined_call_operand.vmem [shape: f32[1,16], index: 6, kind: input, shape index: {}]   ;;  %s1834_s7 = inlined_call_operand.vmem [shape: bf16[16,16], index: 7, kind: input, shape index: {}]   ;;  %s1835_s8 = inlined_call_operand.vmem [shape: f32[1,16], index: 8, kind: input, shape index: {}]   ;;  %s1836_s9 = inlined_call_operand.vmem [shape: bf16[48,16], index: 9, kind: input, shape index: {}]   ;;  %s1837_s10 = inlined_call_operand.vmem [shape: f32[1,16], index: 10, kind: input, shape index: {}]   ;;  %s1838_s11 = inlined_call_operand.vmem [shape: bf16[48,16], index: 11, kind: input, shape index: {}]   ;;  %s1839_s12 = inlined_call_operand.vmem [shape: f32[1,16], index: 12, kind: input, shape index: {}]   ;;  %s1840_s13 = inlined_call_operand.hbm [shape: f32[2,8,16], index: 13, kind: output, shape index: {}]  }
   0x1   :  { %1844 = sst [smem:[#allocation7_spill]] %s1827_s0 }
   0x2   :  { %1845 = sst [smem:[#allocation8_spill]] %s1828_s1 }
   0x3   :  { %1846 = sst [smem:[#allocation9_spill]] %s1829_s2 }
   0x4   :  { %18 = vsyncpa [#allocation5], 0 }
   0x5   :  { %20 = vsyncpa [#allocation5 + $0x1], 0  ;;  %s1559_s25 = smov 0   ;;  %s1561_s26 = smov 0  }
   0x6   :  { %s1563_s27 = smov 0   ;;  %s1565_s28 = smov 0  }
   0x7 LB: > { %s1580_s29 = sadd.s32 4294967295, %s1480_s28   ;;  %s1198_s30 = sadd.s32 4294967294, %s1480_s28   ;;  %s1480_s28 = sphi %s1565_s28, %s1857_s28   ;;  %s1476_s27 = sphi %s1563_s27, %s1856_s27   ;;  %s1472_s26 = sphi %s1561_s26, %s1855_s26   ;;  %s1468_s25 = sphi %s1559_s25, %s1854_s25  }
   0x8   : > { %s1584_s14 = sadd.s32 1, %s1480_s28   ;;  %s311_s15 = sadd.s32 1, %s1476_s27 }
   0x9   : > { %s308_s16 = ssub.s32 %s1480_s28, %s1584_s14  ;;  %p321_p0 = scmp.ne.s32.totalorder %s1476_s27, %s1472_s26 }
   0xa   : > { %p309_p1 = scmp.eq.s32.totalorder %s308_s16, 0  ;;  %p322_p2 = scmp.eq.s32.totalorder %s1580_s29, 1 }
   0xb   : > { %p327_p3 = scmp.ne.s32.totalorder %s1472_s26, %s1468_s25  ;;  %p328_p4 = scmp.eq.s32.totalorder %s1198_s30, 1 }
   0xc   : > { %s1595_s17 = scalar_select %p309_p1, %s1476_s27, %s311_s15  }
   0xd   : > { %p1597_p5 = por %p322_p2, %p321_p0  ;;  %p1601_p6 = por %p328_p4, %p327_p3 }
   0xe   : > { %p1201_p7 = scmp.ge.s32.totalorder %s1480_s28, 1  ;;  %p390_p8 = scmp.lt.s32.totalorder %s1480_s28, 3 }
  0x10   : > { %p391_p9 = pnand %p1201_p7, %p390_p8 }
  0x11   : > { %p434_p10 = scmp.lt.s32.totalorder (!%p391_p9), %s1580_s29, 1  ;;  %s1849_s1 = sld [smem:[#allocation8_spill]] (!%p391_p9) }
  0x12   : > { %394 = sbr.rel (%p391_p9) target bundleno = 1701 (0x6a5), region = 72  ;;  %s1850_s0 = sld [smem:[#allocation7_spill]] (!%p391_p9) }
  0x13   : > { %s1482_s16 = smov (!%p391_p9), 4   ;;  %s1483_s20 = smov (!%p391_p9), 8  }
  0x14   : > { %s1851_s2 = sld [smem:[#allocation9_spill]] (!%p391_p9)  ;;  %s1843_s21 = smov (!%p391_p9), 32  }
  0x17   : > { %v1406_v0 = vld [vmem:[%s1849_s1] sm:$0x3f]   ;;  %s435_s22 = scalar_select %p434_p10, %s1580_s29, 1  ;;  %vm528_vm0 = vcmask 1045504   ;;  %vm495_vm1 = vcmask 31744   ;;  %vm500_vm2 = vcmask 64512  }
  0x18   : > { %1319 = vmatprep.subr.msk.bf16.mxu0 %vm528_vm0, %v1406_v0  ;;  %v530_v1 = vsel %vm528_vm0, %v1406_v0, 0  ;;  %vm521_vm3 = vcmask 97280   ;;  %v1407_v40 = vld [vmem:[%s1830_s3 + $0x10] sm:$0xff]   ;;  %v1484_v41 = vmov 0.0   ;;  %v1408_v42 = vld [vmem:[%s1830_s3 + $0x8] sm:$0xff]   ;;  %vm589_vm4 = vcmask 1040384  }
  0x19   : > { %s1320_s23 = smul.u32 72, %s435_s22  ;;  %1268 = vmatpush3.bf16.msra.mxu0 %v530_v1  ;;  %1273 = vmatprep.subr.bf16.mxu1 %v1484_v41  ;;  %vm604_vm5 = vcmask 130048   ;;  %vm609_vm6 = vcmask 123904   ;;  %vm1485_vm7 = vmmov 0   ;;  %vm638_vm8 = vcmask 1046528   ;;  %s1841_s22 = smov 16  }
  0x1a   : > { %1283 = vmatprep.subr.bf16.mxu0 %v1484_v41  ;;  %1274 = vmatpush3.bf16.msra.mxu1 %v1407_v40  ;;  %v1215_v43 = vld [vmem:[%s1851_s2] ss:$0 sm:$0xff]  ;;  %vm663_vm9 = vcmask 261120   ;;  %vm698_vm10 = vcmask 392192   ;;  %v1410_v40 = vld [vmem:[%s1832_s5 + $0x10] sm:$0xff]  }
  0x1b   : > { %s1617_s15 = scalar_lea.vmem %s1850_s0, %s1320_s23  ;;  %1275 = vmatprep.subr.bf16.mxu1 %v1484_v41  ;;  %1279 = vmatprep.mubr.msk.bf16.mxu1 %vm1485_vm7, %v1484_v41  ;;  %s431_s23 = sand.u32 1, %s1472_s26  }
  0x1c   : > { %v1207_v2 = vld [vmem:[%s1617_s15 + $0x1] ss:$2 sm:$0xff]  ;;  %v1208_v3 = vld [vmem:[%s1617_s15 + $0x11] ss:$2 sm:$0xff]  ;;  %v1211_v4 = vld [vmem:[%s1617_s15 + $0x2] ss:$2 sm:$0xff] }
  0x1d   : > { %v1366_v5 = vpack.i.bf16 %v1208_v3, %v1207_v2  ;;  %v1212_v6 = vld [vmem:[%s1617_s15 + $0x12] ss:$2 sm:$0xff]  ;;  %v1209_v7 = vld [vmem:[%s1617_s15 + $0x21] ss:$2 sm:$0xff]  ;;  %v1210_v8 = vld [vmem:[%s1617_s15 + $0x31] ss:$2 sm:$0xff] }
  0x1e   : > { %v1376_v9 = vpack.i.bf16 %v1212_v6, %v1211_v4  ;;  %v1213_v10 = vld [vmem:[%s1617_s15 + $0x22] ss:$2 sm:$0xff]  ;;  %v1214_v11 = vld [vmem:[%s1617_s15 + $0x32] ss:$2 sm:$0xff]  ;;  %v1371_v12 = vpack.i.bf16 %v1210_v8, %v1209_v7  ;;  %1276 = vmatpush3.bf16.msra.mxu1 %v1408_v42  ;;  %s1202_s24 = sshll.u32 %s431_s23, 3 }
  0x1f   : > { %1367 = vrot.lane.b32.xlu0 %v1366_v5, %s1482_s16  ;;  %v1381_v13 = vpack.i.bf16 %v1214_v11, %v1213_v10  ;;  %v440_v15 = vld [vmem:[%s1617_s15] ss:$2 sm:$0xff]  ;;  %v1204_v16 = vld [vmem:[%s1617_s15 + $0x10] ss:$2 sm:$0xff]  ;;  %1277 = vmatprep.subr.bf16.mxu1 %v1484_v41 }
  0x20   : > { %1377 = vrot.lane.b32.xlu1 %v1376_v9, %s1483_s20  ;;  %v1205_v25 = vld [vmem:[%s1617_s15 + $0x20] ss:$2 sm:$0xff]  ;;  %v1206_v26 = vld [vmem:[%s1617_s15 + $0x30] ss:$2 sm:$0xff]  ;;  %s1126_s15 = scalar_lea.sflag [#allocation5], %s431_s23 }
  0x21   : > { %v1409_v8 = vld [vmem:[%s1830_s3] sm:$0xff]   ;;  %v1411_v42 = vld [vmem:[%s1832_s5 + $0x8] sm:$0xff]  }
  0x22   : > { %1278 = vmatpush3.bf16.msra.mxu1 %v1409_v8 }
  0x23   : > { %1372 = vrot.lane.b32.xlu0 %v1371_v12, %s1482_s16  ;;  %1293 = vmatprep.subr.bf16.mxu1 %v1484_v41 }
  0x24   : > { %1382 = vrot.lane.b32.xlu1 %v1381_v13, %s1483_s20 }
  0x91   : > { %v1368_v14 = vpop.permute.xlu0 %1367 }
  0x92   : > { %v1370_v17 = vunpack.i.h.bf16 %v1368_v14  ;;  %v1369_v18 = vunpack.i.l.bf16 %v1368_v14  ;;  %v1378_v19 = vpop.permute.xlu1 %1377 }
  0x93   : > { %v1380_v20 = vunpack.i.h.bf16 %v1378_v19  ;;  %v1379_v21 = vunpack.i.l.bf16 %v1378_v19 }
  0x94   : > { %v496_v22 = vsel %vm495_vm1, %v440_v15, %v1369_v18  ;;  %v497_v23 = vsel %vm495_vm1, %v1204_v16, %v1370_v17 }
  0x95   : > { %v1373_v24 = vpop.permute.xlu0 %1372  ;;  %v501_v27 = vsel %vm500_vm2, %v496_v22, %v1379_v21  ;;  %v502_v28 = vsel %vm500_vm2, %v497_v23, %v1380_v20 }
  0x96   : > { %v1375_v29 = vunpack.i.h.bf16 %v1373_v24  ;;  %v1374_v30 = vunpack.i.l.bf16 %v1373_v24  ;;  %v1383_v31 = vpop.permute.xlu1 %1382  ;;  %v505_v32 = vpack.c.bf16 %v502_v28, %v501_v27 }
  0x97   : > { %v1385_v33 = vunpack.i.h.bf16 %v1383_v31  ;;  %v1384_v34 = vunpack.i.l.bf16 %v1383_v31 }
  0x98   : > { %v498_v35 = vsel %vm495_vm1, %v1205_v25, %v1374_v30  ;;  %v499_v36 = vsel %vm495_vm1, %v1206_v26, %v1375_v29  ;;  %1269 = vmatprep.mubr.msk.bf16.mxu0 %vm521_vm3, %v505_v32 }
  0x99   : > { %v503_v37 = vsel %vm500_vm2, %v498_v35, %v1384_v34  ;;  %v504_v38 = vsel %vm500_vm2, %v499_v36, %v1385_v33 }
  0x9a   : > { %v506_v39 = vpack.c.bf16 %v504_v38, %v503_v37 }
  0x9c   : > { %1270 = vmatmul.mubr.msk.bf16.vlgmr.msra.gmra.mxu0 %vm521_vm3, %v506_v39 }
  0x9d   : > { %1289 = vmatprep.mubr.msk.bf16.mxu0 %vm1485_vm7, %v1484_v41  ;;  %1284 = vmatpush3.bf16.msra.mxu0 %v1410_v40 }
  0x9e   : > { %1285 = vmatprep.subr.bf16.mxu0 %v1484_v41 }
  0xa1   : > { %1286 = vmatpush3.bf16.msra.mxu0 %v1411_v42 }
  0xa2   : > { %1287 = vmatprep.subr.bf16.mxu0 %v1484_v41 }
 0x15c   : > { %v1271_v44 = vpop.f32.mrf.mxu0 }
 0x15d   : > { %v575_v45 = vadd.f32 %v1271_v44, %v1215_v43 }
 0x15e   : > { %v566_v46 = vpop.f32.mrf.mxu0 }
 0x15f   : > { %v567_v47 = vadd.f32 %v1215_v43, %v566_v46  ;;  %v583_v49 = vmax.f32 %v575_v45, 0.0 }
 0x160   : > { %v1272_v48 = vpop.f32.mrf.mxu0 }
 0x161   : > { %v581_v50 = vmax.f32 %v567_v47, 0.0  ;;  %v578_v51 = vadd.f32 %v1272_v48, %v1215_v43  ;;  %v593_v56 = vrot.slane %v583_v49, 7 }
 0x162   : > { %v569_v52 = vpop.f32.mrf.mxu0 }
 0x163   : > { %v590_v53 = vrot.slane %v581_v50, 7  ;;  %v584_v54 = vmax.f32 %v578_v51, 0.0  ;;  %v570_v55 = vadd.f32 %v1215_v43, %v569_v52  ;;  %v1219_v43 = vld [vmem:[%s1831_s4] ss:$0 sm:$0xff] }
 0x164   : > { %v1412_v51 = vld [vmem:[%s1832_s5] sm:$0xff]  }
 0x165   : > { %v602_v57 = vsel %vm589_vm4, 0.0, %v590_v53  ;;  %v595_v58 = vrot.slane %v584_v54, 7  ;;  %v582_v59 = vmax.f32 %v570_v55, 0.0  ;;  %1288 = vmatpush3.bf16.msra.mxu0 %v1412_v51 }
 0x166   : > { %605 = vst.msk [vmem:[#allocation2] sm:$0xff] %vm604_vm5, %v602_v57  ;;  %1299 = vmatprep.subr.bf16.mxu0 %v1484_v41 }
 0x167   : > { %v596_v60 = vsel %vm589_vm4, %v593_v56, %v595_v58  ;;  %v603_v61 = vsel %vm589_vm4, %v595_v58, 0.0  ;;  %v591_v62 = vrot.slane %v582_v59, 7 }
 0x168   : > { %608 = vst.msk [vmem:[#allocation2 + $0x18] sm:$0xff] %vm604_vm5, %v596_v60 }
 0x169   : > { %610 = vst.msk [vmem:[#allocation2 + $0x20] sm:$0x3] %vm609_vm6, %v603_v61  ;;  %v592_v63 = vsel %vm589_vm4, %v590_v53, %v591_v62  ;;  %v594_v0 = vsel %vm589_vm4, %v591_v62, %v593_v56 }
 0x16a   : > { %606 = vst.msk [vmem:[#allocation2 + $0x8] sm:$0xff] %vm604_vm5, %v592_v63  ;;  %607 = vst.msk [vmem:[#allocation2 + $0x10] sm:$0xff] %vm604_vm5, %v594_v0 }
 0x171   : > { %v611_v1 = vld [vmem:[#allocation2] ss:$2 sm:$0xff]  ;;  %v613_v2 = vld [vmem:[#allocation2 + $0x10] ss:$2 sm:$0xff]  ;;  %v615_v3 = vld [vmem:[#allocation2 + $0x1] ss:$2 sm:$0xff] }
 0x172   : > { %v617_v4 = vld [vmem:[#allocation2 + $0x11] ss:$2 sm:$0xff]  ;;  %v618_v5 = vmax.f32 %v611_v1, %v615_v3  ;;  %v621_v7 = vld [vmem:[#allocation2 + $0x2] ss:$2 sm:$0xff]  ;;  %v623_v9 = vld [vmem:[#allocation2 + $0x12] ss:$2 sm:$0xff] }
 0x173   : > { %v619_v6 = vmax.f32 %v613_v2, %v617_v4 }
 0x174   : > { %v1665_v10 = vmax.f32 %v618_v5, %v621_v7 }
 0x175   : > { %v1667_v11 = vmax.f32 %v619_v6, %v623_v9 }
 0x176   : > { %v628_v12 = vrot.slane %v1665_v10, 7 }
 0x177   : > { %v629_v13 = vrot.slane %v1667_v11, 7 }
 0x178   : > { %v634_v14 = vsel %vm589_vm4, 0.0, %v628_v12 }
 0x179   : > { %v630_v15 = vsel %vm589_vm4, %v628_v12, %v629_v13  ;;  %v635_v16 = vsel %vm589_vm4, %v629_v13, 0.0  ;;  %v650_v17 = vrot.slane %v634_v14, 2  ;;  %v639_v18 = vrot.slane %v634_v14, 1 }
 0x17a   : > { %v651_v19 = vrot.slane %v630_v15, 2  ;;  %v653_v20 = vrot.slane %v635_v16, 2  ;;  %v640_v21 = vrot.slane %v630_v15, 1  ;;  %v642_v22 = vrot.slane %v635_v16, 1 }
 0x17c   : > { %v652_v23 = vsel %vm528_vm0, %v650_v17, %v651_v19  ;;  %v654_v24 = vsel %vm528_vm0, %v651_v19, %v653_v20  ;;  %v641_v25 = vsel %vm638_vm8, %v639_v18, %v640_v21  ;;  %v643_v26 = vsel %vm638_vm8, %v640_v21, %v642_v22  ;;  %v1413_v19 = vld [vmem:[%s1834_s7] sm:$0xff]   ;;  %v1414_v20 = vld [vmem:[%s1836_s9 + $0x10] sm:$0xff]   ;;  %v1415_v21 = vld [vmem:[%s1836_s9 + $0x8] sm:$0xff]  }
 0x17d   : > { %v1391_v27 = vpack.i.bf16 %v654_v24, %v652_v23  ;;  %v1386_v28 = vpack.i.bf16 %v643_v26, %v641_v25  ;;  %v1224_v22 = vld [vmem:[%s1833_s6] ss:$0 sm:$0xff] }
 0x17f   : > { %1392 = vrot.lane.b32.xlu1 %v1391_v27, %s1843_s21  ;;  %1387 = vrot.lane.b32.xlu0 %v1386_v28, %s1841_s22 }
 0x1f1   : > { %v1393_v29 = vpop.permute.xlu1 %1392  ;;  %v1388_v30 = vpop.permute.xlu0 %1387 }
 0x1f2   : > { %v1395_v31 = vunpack.i.h.bf16 %v1393_v29  ;;  %v1394_v32 = vunpack.i.l.bf16 %v1393_v29  ;;  %v1390_v33 = vunpack.i.h.bf16 %v1388_v30  ;;  %v1389_v34 = vunpack.i.l.bf16 %v1388_v30 }
 0x1f4   : > { %v662_v35 = vsel %vm604_vm5, %v630_v15, %v1390_v33  ;;  %v661_v36 = vsel %vm604_vm5, %v634_v14, %v1389_v34  ;;  %v1416_v33 = vld [vmem:[%s1836_s9] sm:$0xff]  }
 0x1f5   : > { %v664_v37 = vsel %vm663_vm9, %v661_v36, %v1394_v32  ;;  %v665_v38 = vsel %vm663_vm9, %v662_v35, %v1395_v31 }
 0x1f6   : > { %v666_v39 = vpack.c.bf16 %v665_v38, %v664_v37 }
 0x1f8   : > { %1280 = vmatmul.mubr.msk.bf16.vlgmr.msra.gmra.mxu1 %vm698_vm10, %v666_v39 }
 0x1f9   : > { %1295 = vmatprep.mubr.msk.bf16.mxu1 %vm1485_vm7, %v1484_v41  ;;  %1294 = vmatpush3.bf16.msra.mxu1 %v1413_v19 }
 0x1fa   : > { %1309 = vmatprep.subr.bf16.mxu1 %v1484_v41 }
 0x2b8   : > { %v736_v44 = vpop.f32.mrf.mxu1 }
 0x2b9   : > { %v737_v45 = vadd.f32 %v1219_v43, %v736_v44 }
 0x2ba   : > { %v1281_v46 = vpop.f32.mrf.mxu1 }
 0x2bb   : > { %v743_v47 = vmax.f32 %v737_v45, 0.0 }
 0x2bc   : > { %v739_v48 = vpop.f32.mrf.mxu1 }
 0x2bd   : > { %v747_v49 = vrot.slane %v743_v47, 7  ;;  %v740_v50 = vadd.f32 %v1219_v43, %v739_v48  ;;  %v1417_v48 = vld [vmem:[%s1838_s11 + $0x10] sm:$0xff]  }
 0x2be   : > { %v1282_v52 = vpop.f32.mrf.mxu1 }
 0x2bf   : > { %v744_v53 = vmax.f32 %v740_v50, 0.0  ;;  %v753_v54 = vsel %vm589_vm4, 0.0, %v747_v49  ;;  %v1418_v50 = vld [vmem:[%s1838_s11 + $0x8] sm:$0xff]  }
 0x2c0   : > { %v757_v56 = vrot.slane %v753_v54, 1  ;;  %v768_v57 = vrot.slane %v753_v54, 2 }
 0x2c1   : > { %v748_v55 = vrot.slane %v744_v53, 7  ;;  %v1419_v53 = vld [vmem:[%s1838_s11] sm:$0xff]  }
 0x2c3   : > { %v749_v58 = vsel %vm589_vm4, %v747_v49, %v748_v55  ;;  %v754_v59 = vsel %vm589_vm4, %v748_v55, 0.0 }
 0x2c4   : > { %v758_v60 = vrot.slane %v749_v58, 1  ;;  %v760_v61 = vrot.slane %v754_v59, 1  ;;  %v769_v62 = vrot.slane %v749_v58, 2  ;;  %v771_v63 = vrot.slane %v754_v59, 2 }
 0x2c6   : > { %v770_v0 = vsel %vm528_vm0, %v768_v57, %v769_v62  ;;  %v772_v1 = vsel %vm528_vm0, %v769_v62, %v771_v63  ;;  %v759_v2 = vsel %vm638_vm8, %v757_v56, %v758_v60  ;;  %v761_v3 = vsel %vm638_vm8, %v758_v60, %v760_v61 }
 0x2c7   : > { %v1401_v4 = vpack.i.bf16 %v772_v1, %v770_v0  ;;  %v1396_v5 = vpack.i.bf16 %v761_v3, %v759_v2 }
 0x2c9   : > { %1402 = vrot.lane.b32.xlu1 %v1401_v4, %s1843_s21  ;;  %1397 = vrot.lane.b32.xlu0 %v1396_v5, %s1841_s22  ;;  %s1852_s22 = smov 16  }
 0x33b   : > { %v1403_v6 = vpop.permute.xlu1 %1402  ;;  %v1398_v7 = vpop.permute.xlu0 %1397 }
 0x33c   : > { %v1405_v8 = vunpack.i.h.bf16 %v1403_v6  ;;  %v1404_v9 = vunpack.i.l.bf16 %v1403_v6  ;;  %v1400_v12 = vunpack.i.h.bf16 %v1398_v7  ;;  %v1399_v13 = vunpack.i.l.bf16 %v1398_v7 }
 0x33e   : > { %v780_v14 = vsel %vm604_vm5, %v749_v58, %v1400_v12  ;;  %v779_v15 = vsel %vm604_vm5, %v753_v54, %v1399_v13  ;;  %v1232_v54 = vld [vmem:[%s1837_s10] ss:$0 sm:$0xff] }
 0x33f   : > { %v782_v16 = vsel %vm663_vm9, %v780_v14, %v1405_v8  ;;  %v781_v17 = vsel %vm663_vm9, %v779_v15, %v1404_v9  ;;  %v1229_v12 = vld [vmem:[%s1835_s8] ss:$0 sm:$0xff] }
 0x340   : > { %v783_v18 = vpack.c.bf16 %v782_v16, %v781_v17  ;;  %v1237_v13 = vld [vmem:[%s1839_s12] ss:$0 sm:$0xff] }
 0x342   : > { %1290 = vmatmul.mubr.msk.bf16.vlgmr.msra.gmra.mxu0 %vm698_vm10, %v783_v18 }
 0x343   : > { %1305 = vmatprep.mubr.msk.bf16.mxu0 %vm1485_vm7, %v1484_v41  ;;  %1300 = vmatpush3.bf16.msra.mxu0 %v1414_v20 }
 0x344   : > { %1301 = vmatprep.subr.bf16.mxu0 %v1484_v41 }
 0x347   : > { %1302 = vmatpush3.bf16.msra.mxu0 %v1415_v21 }
 0x348   : > { %1303 = vmatprep.subr.bf16.mxu0 %v1484_v41 }
 0x34b   : > { %1304 = vmatpush3.bf16.msra.mxu0 %v1416_v33 }
 0x402   : > { %v852_v23 = vpop.f32.mrf.mxu0 }
 0x403   : > { %v853_v24 = vadd.f32 %v1224_v22, %v852_v23 }
 0x404   : > { %v1291_v25 = vpop.f32.mrf.mxu0 }
 0x405   : > { %v859_v26 = vadd.f32 %v853_v24, %v1665_v10 }
 0x406   : > { %v855_v27 = vpop.f32.mrf.mxu0 }
 0x407   : > { %v861_v28 = vmax.f32 %v859_v26, 0.0  ;;  %v856_v29 = vadd.f32 %v1224_v22, %v855_v27 }
 0x408   : > { %v1292_v30 = vpop.f32.mrf.mxu0 }
 0x409   : > { %v865_v31 = vrot.slane %v861_v28, 7  ;;  %v860_v32 = vadd.f32 %v856_v29, %v1667_v11 }
 0x40b   : > { %v871_v34 = vsel %vm589_vm4, 0.0, %v865_v31  ;;  %v862_v35 = vmax.f32 %v860_v32, 0.0 }
 0x40c   : > { %873 = vst.msk [vmem:[#allocation3] sm:$0xff] %vm604_vm5, %v871_v34 }
 0x40d   : > { %v866_v36 = vrot.slane %v862_v35, 7 }
 0x40f   : > { %v867_v10 = vsel %vm589_vm4, %v865_v31, %v866_v36  ;;  %v872_v37 = vsel %vm589_vm4, %v866_v36, 0.0 }
 0x410   : > { %874 = vst.msk [vmem:[#allocation3 + $0x8] sm:$0xff] %vm604_vm5, %v867_v10 }
 0x411   : > { %875 = vst.msk [vmem:[#allocation3 + $0x10] sm:$0x3] %vm609_vm6, %v872_v37 }
 0x417   : > { %v877_v38 = vld [vmem:[#allocation3 + $0x1] ss:$2 sm:$0xff]  ;;  %v937_v42 = vld [vmem:[#allocation3] ss:$2 sm:$0xff] }
 0x418   : > { %v939_v11 = vld [vmem:[#allocation3 + $0x2] ss:$2 sm:$0xff]  ;;  %941 = vrot.lane.b32.xlu0 %v877_v38, %s1852_s22  ;;  %v878_v39 = vpack.c.bf16 %v877_v38, %v877_v38 }
 0x419   : > { %945 = vrot.lane.b32.xlu1 %v939_v11, %s1843_s21  ;;  %s1853_s21 = smov 32  }
 0x41a   : > { %1296 = vmatmul.mubr.msk.bf16.vlgmr.msra.gmra.mxu1 %vm604_vm5, %v878_v39 }
 0x41b   : > { %1315 = vmatprep.mubr.msk.bf16.mxu1 %vm1485_vm7, %v1484_v41  ;;  %1310 = vmatpush3.bf16.msra.mxu1 %v1417_v48 }
 0x41c   : > { %1311 = vmatprep.subr.bf16.mxu1 %v1484_v41 }
 0x41f   : > { %1312 = vmatpush3.bf16.msra.mxu1 %v1418_v50 }
 0x420   : > { %1313 = vmatprep.subr.bf16.mxu1 %v1484_v41 }
 0x423   : > { %1314 = vmatpush3.bf16.msra.mxu1 %v1419_v53 }
 0x48a   : > { %v942_v43 = vpop.permute.xlu0 %941 }
 0x48b   : > { %v946_v40 = vpop.permute.xlu1 %945  ;;  %v948_v44 = vsel %vm604_vm5, %v937_v42, %v942_v43 }
 0x48c   : > { %v949_v45 = vsel %vm663_vm9, %v948_v44, %v946_v40 }
 0x48d   : > { %v950_v46 = vpack.c.bf16 %v949_v45, %v949_v45 }
 0x48f   : > { %1306 = vmatmul.mubr.msk.bf16.vlgmr.msra.gmra.mxu0 %vm698_vm10, %v950_v46 }
 0x4da   : > { %v931_v47 = vpop.f32.mrf.mxu1 }
 0x4db   : > { %v932_v15 = vadd.f32 %v1229_v12, %v931_v47 }
 0x4dc   : > { %v1297_v49 = vpop.f32.mrf.mxu1 }
 0x4de   : > { %v934_v51 = vpop.f32.mrf.mxu1 }
 0x4e0   : > { %v1298_v52 = vpop.f32.mrf.mxu1 }
 0x54f   : > { %v1019_v55 = vpop.f32.mrf.mxu0 }
 0x550   : > { %v1020_v56 = vadd.f32 %v1232_v54, %v1019_v55 }
 0x551   : > { %v1307_v57 = vpop.f32.mrf.mxu0 }
 0x552   : > { %v1025_v58 = vmax.f32 %v1020_v56, 0.0 }
 0x553   : > { %v1022_v59 = vpop.f32.mrf.mxu0 }
 0x554   : > { %v1027_v60 = vrot.slane %v1025_v58, 7 }
 0x555   : > { %v1308_v61 = vpop.f32.mrf.mxu0 }
 0x556   : > { %v1029_v62 = vsel %vm589_vm4, 0.0, %v1027_v60  ;;  %v1030_v41 = vsel %vm589_vm4, %v1027_v60, 0.0 }
 0x557   : > { %v1033_v63 = vrot.slane %v1029_v62, 1  ;;  %v1034_v0 = vrot.slane %v1030_v41, 1  ;;  %v1039_v1 = vrot.slane %v1029_v62, 2  ;;  %v1040_v2 = vrot.slane %v1030_v41, 2 }
 0x559   : > { %v1041_v3 = vsel %vm528_vm0, %v1039_v1, %v1040_v2  ;;  %v1035_v4 = vsel %vm638_vm8, %v1033_v63, %v1034_v0 }
 0x55a   : > { %1042 = vrot.lane.b32.xlu1 %v1041_v3, %s1853_s21  ;;  %1036 = vrot.lane.b32.xlu0 %v1035_v4, %s1852_s22  ;;  %s1243_s22 = sshll.u32 %s1580_s29, 7  ;;  %s433_s21 = scalar_lea.vmem [#allocation4], %s1202_s24 }
 0x55b   : > { %s1139_s0 = sshll.u32 %s433_s21, 4  ;;  %s1791_s30 = scalar_lea.hbm %s1840_s13, %s1243_s22  ;;  %s1140_s0 = int_to_ptr.vmem [resolvable:$true] %s1139_s0 }
 0x55c   : > { %s1420_s16 = scalar_lea.vmem %s1140_s0, 128  ;;  %s1488_s29 = smov [#allocation4]  }
 0x55d   : > { %p1421_p11 = scmp.ne.s32.totalorder %s1140_s0, %s1420_s16  ;;  %s1424_s24 = sshll.u32 %s1488_s29, 4  ;;  %s1425_s24 = int_to_ptr.vmem [resolvable:$false] %s1424_s24 }
 0x55e   : > { %s1426_s20 = scalar_lea.vmem %s1425_s24, 256  ;;  %p1427_p0 = scmp.lt.s32.totalorder %s1140_s0, %s1425_s24 }
 0x55f   : > { %p1422_p12 = pnand %p1421_p11, %p1597_p5  ;;  %p1428_p1 = scmp.lt.s32.totalorder %s1426_s20, %s1420_s16 }
 0x561   : > { %p1423_p13 = pneg %p1422_p12  ;;  %p1429_p2 = por %p1428_p1, %p1427_p0 }
 0x563   : > { %p1430_p3 = pnand %p1429_p2, %p1423_p13 }
 0x5cc   : > { %v1043_v5 = vpop.permute.xlu1 %1042  ;;  %v1037_v6 = vpop.permute.xlu0 %1036 }
 0x5cd   : > { %v1045_v7 = vsel %vm604_vm5, %v1029_v62, %v1037_v6 }
 0x5ce   : > { %v1046_v8 = vsel %vm663_vm9, %v1045_v7, %v1043_v5 }
 0x5cf   : > { %v1047_v9 = vpack.c.bf16 %v1046_v8, %v1046_v8 }
 0x5d1   : > { %1316 = vmatmul.mubr.msk.bf16.vlgmr.msra.gmra.mxu1 %vm698_vm10, %v1047_v9 }
 0x691   : > { %v1116_v14 = vpop.f32.mrf.mxu1 }
 0x692   : > { %v1117_v16 = vadd.f32 %v1237_v13, %v1116_v14 }
 0x693   : > { %v1317_v17 = vpop.f32.mrf.mxu1 }
 0x694   : > { %v1122_v18 = vadd.f32 %v1117_v16, %v932_v15 }
 0x695   : > { %v1119_v19 = vpop.f32.mrf.mxu1 }
 0x696   : > { %v1123_v20 = vmax.f32 %v1122_v18, 0.0 }
 0x697   : > { %v1318_v21 = vpop.f32.mrf.mxu1 }
 0x698   : > { %1124 = vst.msk [vmem:[%s433_s21] sm:$0xff] %vm604_vm5, %v1123_v20 }
 0x699   : > { %1433 = shalt.err (!%p1430_p3)
}
 0x69a   : > { %s1434_s1 = scalar_lea.hbm %s1791_s30, 128  ;;  %s1438_s22 = scalar_lea.hbm %s1840_s13, 256 }
 0x69b   : > { %p1435_p4 = scmp.ne.s32.totalorder %s1791_s30, %s1434_s1  ;;  %p1439_p9 = scmp.lt.s32.totalorder %s1791_s30, %s1840_s13 }
 0x69c   : > { %p1440_p10 = scmp.lt.s32.totalorder %s1438_s22, %s1434_s1 }
 0x69d   : > { %p1436_p7 = pnand %p1435_p4, %p1597_p5 }
 0x69e   : > { %p1441_p11 = por %p1440_p10, %p1439_p9 }
 0x69f   : > { %p1437_p8 = pneg %p1436_p7 }
 0x6a1   : > { %p1442_p12 = pnand %p1441_p11, %p1437_p8 }
 0x6a3   : > { %1445 = shalt.err (!%p1442_p12)
}
 0x6a4   : > { %1321 = dma.vmem_to_hbm [thread:$0]  (%p1597_p5), %s1140_s0, 128, %s1791_s30, %s1126_s15  }
 0x6a5 PF: > { %p1327_p13 = scmp.ge.s32.totalorder %s1480_s28, 2  ;;  %s1151_s16 = sand.u32 1, %s1468_s25  }
 0x6a6   : > { %s1152_s24 = scalar_lea.sflag [#allocation5], %s1151_s16 }
 0x6a7   : > { %p1324_p0 = pnand %p1327_p13, %p1601_p6 }
 0x6a9   : > { %p1325_p1 = pneg %p1324_p0 }
 0x6ab   : > { %1463 = dma.done.wait (%p1325_p1), %s1152_s24, 128  }
 0x6ac   : > { %1465 = vsyncadd (%p1325_p1), %s1152_s24, 4294967168  ;;  %p23_p2 = scmp.ge.s32.totalorder %s1584_s14, 4   ;;  %s1854_s25 = smov %s1472_s26 }
 0x6ad   : > { %s1855_s26 = smov %s1476_s27  ;;  %s1856_s27 = smov %s1595_s17 }
 0x6ae   : > { %s1857_s28 = smov %s1584_s14  ;;  %25 = sbr.rel (!%p23_p2) target bundleno = 7 (0x7), region = 125 }
 0x6b3   :  { %1157 = vsyncpa [#allocation5], 1 }
 0x6b4   :  { %1159 = vsyncpa [#allocation5 + $0x1], 1 }

</bundles_post_ra>
